<compile_context>
chip_gen: v5e
topology: v5e:2x2
jax: 0.10.0
libtpu: 0.0.40
codegen_flags: <defaults>
</compile_context>

<pallas_src>
import math

import jax
import jax.numpy as jnp
from jax.experimental import pallas as pl
from jax.experimental.pallas import tpu as pltpu


def _identity1d_kernel(x_ref, w_ref, o_ref):
    # (TB, TL) * (1, TL) broadcast multiply; cast keeps store dtype exact.
    o_ref[...] = (x_ref[...] * w_ref[...]).astype(o_ref.dtype)


def _tpu_budgets():
    """(target_block_bytes, vmem_limit_bytes) tuned per TPU generation."""
    vmem_phys = None
    try:
        info = pltpu.get_tpu_info()
        vmem_phys = getattr(info, "vmem_capacity_bytes", None)
    except Exception:
        vmem_phys = None
    if vmem_phys is None or vmem_phys <= (64 << 20):
        # v7x (64 MiB physical VMEM) or unknown: conservative budgets.
        # 4 MiB blocks keep the ~0.35 us/step overhead <5% at 3.2 TB/s HBM
        # while 2 double-buffered inputs + 2 outputs stay well under VMEM.
        return 4 << 20, 30 << 20
    # v5e / v6e: 128 MiB physical VMEM -> bigger blocks, bigger scoped limit.
    return 16 << 20, 64 << 20


def _choose_tiles(rows, lane, dtype, target_block_bytes):
    """Pick (row_tile, lane_tile) for a (rows, lane) array.

    - lane_tile is the full lane width unless even a minimal-row block would
      exceed the budget AND the lane dim splits on 128-lane boundaries.
    - row_tile is sized purely by bytes and rounded to the packed-sublane
      multiple for the dtype (8 for 32-bit, 16 for 16-bit, 32 for 8-bit).
    """
    itemsize = jnp.dtype(dtype).itemsize
    sub = max(8, 32 // itemsize)  # packed sublanes per vreg for this dtype

    if lane % 128 == 0 and sub * lane * itemsize > target_block_bytes:
        tl = ((target_block_bytes // (sub * itemsize)) // 128) * 128
        tl = min(lane, max(128, tl))
    else:
        tl = lane

    if rows <= sub:
        tb = rows  # full extent is always a legal block dim
    else:
        by_bytes = max(sub, target_block_bytes // max(1, tl * itemsize))
        tb = min(rows, by_bytes)
        tb = max(sub, (tb // sub) * sub)
    return tb, tl


def identity1d(x, weight, weight_mask, *, donate_x=False,
               target_block_bytes=None, vmem_limit_bytes=None):
    """x: (..., F), weight: (F,), weight_mask: (F,) -> same shape/dtype as x."""
    orig_shape = x.shape
    F = orig_shape[-1]
    assert weight.shape == (F,) and weight_mask.shape == (F,)

    default_blk, default_vmem = _tpu_budgets()
    if target_block_bytes is None:
        target_block_bytes = default_blk
    if vmem_limit_bytes is None:
        vmem_limit_bytes = default_vmem

    # Fuse mask*weight ONCE in the wrapper (O(F)); product in f32, single cast.
    w = (weight_mask.astype(jnp.float32) * weight.astype(jnp.float32)).astype(x.dtype)

    # Flatten leading dims to a single batch axis.
    B = 1
    for d in orig_shape[:-1]:
        B *= d
    x2 = x.reshape(B, F)

    # Lane-dense view: fold k = lcm(F,128)//F consecutive rows together so the
    # last dim becomes a multiple of 128 -> unmasked full-width vector stores.
    k = 128 // math.gcd(F, 128)
    if F % 128 == 0:
        lane, xs, ws = F, x2, w.reshape(1, F)
    elif k > 1 and B % k == 0:
        lane = k * F
        xs = x2.reshape(B // k, lane)              # free row-major view
        ws = jnp.tile(w, k).reshape(1, lane)       # weight repeated k times
    else:
        # Fallback: full-F blocks (masked partial stores, still correct).
        lane, xs, ws = F, x2, w.reshape(1, F)

    rows = xs.shape[0]
    tb, tl = _choose_tiles(rows, lane, x.dtype, target_block_bytes)
    grid = (pl.cdiv(rows, tb), pl.cdiv(lane, tl))

    out = pl.pallas_call(
        _identity1d_kernel,
        out_shape=jax.ShapeDtypeStruct((rows, lane), x.dtype),
        grid_spec=pltpu.PrefetchScalarGridSpec(
            num_scalar_prefetch=0,
            grid=grid,
            in_specs=[
                pl.BlockSpec((tb, tl), lambda i, j: (i, j)),   # x tile (pipelined)
                pl.BlockSpec((1, tl), lambda i, j: (0, j)),    # fused weight row
            ],
            out_specs=pl.BlockSpec((tb, tl), lambda i, j: (i, j)),
        ),
        compiler_params=pltpu.CompilerParams(
            dimension_semantics=("parallel", "parallel"),
            vmem_limit_bytes=vmem_limit_bytes,
        ),
        input_output_aliases=({0: 0} if donate_x else {}),
    )(xs, ws)

    return out.reshape(orig_shape)


if __name__ == "__main__":
    key = jax.random.PRNGKey(0)
    keys = jax.random.split(key, 8)

    # --- 1) Module-default init (weight=ones, mask=ones), F=32, B=8 ---
    #     Exercises the lane-dense fold: k=4 -> (2, 128) view.
    F1, B1 = 32, 8
    x1 = jax.random.normal(keys[0], (B1, F1), dtype=jnp.float32)
    w1 = jnp.ones((F1,), dtype=jnp.float32)        # reset_parameters()
    m1 = jnp.ones((F1,), dtype=jnp.float32)        # registered buffer
    o1 = identity1d(x1, w1, m1)
    jax.block_until_ready(o1)
    assert o1.shape == x1.shape and o1.dtype == x1.dtype
    assert jnp.allclose(o1, x1 * (m1 * w1)), "mismatch (ones init)"

    # --- 2) F % 128 == 0, non-trivial weight/mask ---
    F2, B2 = 256, 512
    x2 = jax.random.normal(keys[1], (B2, F2), dtype=jnp.float32)
    w2 = jax.random.normal(keys[2], (F2,), dtype=jnp.float32)
    m2 = (jax.random.uniform(keys[3], (F2,)) > 0.5).astype(jnp.float32)
    o2 = identity1d(x2, w2, m2)
    jax.block_until_ready(o2)
    assert jnp.allclose(o2, x2 * (m2 * w2), atol=1e-6), "mismatch (F%128==0)"

    # --- 3) Generalized lcm path (F=192 -> lane=384) with bf16 input ---
    F3, B3 = 192, 64
    x3 = jax.random.normal(keys[4], (B3, F3), dtype=jnp.float32).astype(jnp.bfloat16)
    w3 = jax.random.normal(keys[5], (F3,), dtype=jnp.float32)
    m3 = (jax.random.uniform(keys[6], (F3,)) > 0.5).astype(jnp.float32)
    o3 = identity1d(x3, w3, m3)
    jax.block_until_ready(o3)
    ref3 = (x3.astype(jnp.float32) * (m3 * w3)).astype(jnp.bfloat16)
    assert o3.dtype == jnp.bfloat16
    assert jnp.allclose(o3.astype(jnp.float32), ref3.astype(jnp.float32),
                        rtol=5e-2, atol=5e-2), "mismatch (bf16 / F=192)"

    # --- 4) 2-D (rows, lanes) grid path: force a tiny block budget ---
    F4, B4 = 1024, 64
    x4 = jax.random.normal(keys[7], (B4, F4), dtype=jnp.float32)
    w4 = jnp.full((F4,), 0.5, dtype=jnp.float32)
    m4 = jnp.ones((F4,), dtype=jnp.float32)
    o4 = identity1d(x4, w4, m4, target_block_bytes=16 << 10)
    jax.block_until_ready(o4)
    assert jnp.allclose(o4, x4 * 0.5, atol=1e-6), "mismatch (lane-tiled grid)"

    # --- 5) Fallback path (no lane-dense view possible): F=48, B=5 ---
    x5 = jax.random.normal(keys[0], (5, 48), dtype=jnp.float32)
    w5 = jax.random.normal(keys[1], (48,), dtype=jnp.float32)
    m5 = (jax.random.uniform(keys[2], (48,)) > 0.5).astype(jnp.float32)
    o5 = identity1d(x5, w5, m5)
    jax.block_until_ready(o5)
    assert jnp.allclose(o5, x5 * (m5 * w5), atol=1e-6), "mismatch (fallback)"

    print("KERNEL_OK")
</pallas_src>

<mosaic_0001>
module attributes {stable_mosaic.version = 11 : i64} {
  func.func @_identity1d_kernel(%arg0: i32, %arg1: i32, %arg2: memref<2x128xf32, #tpu.memory_space<vmem>>, %arg3: memref<1x128xf32, #tpu.memory_space<vmem>>, %arg4: memref<2x128xf32, #tpu.memory_space<vmem>>) attributes {dimension_semantics = [#tpu.dimension_semantics<parallel>, #tpu.dimension_semantics<parallel>], iteration_bounds = array<i64: 1, 1>, scalar_prefetch = 0 : i64, scratch_operands = 0 : i64, tpu.core_type = #tpu.core_type<tc>, window_params = [{transform_indices = @transform_0, window_bounds = array<i64: 2, 128>}, {transform_indices = @transform_1, window_bounds = array<i64: 1, 128>}, {transform_indices = @transform_2, window_bounds = array<i64: 2, 128>}]} {
    %c0 = arith.constant 0 : index
    %c0_0 = arith.constant 0 : index
    %0 = vector.load %arg2[%c0, %c0_0] : memref<2x128xf32, #tpu.memory_space<vmem>>, vector<2x128xf32>
    %c0_1 = arith.constant 0 : index
    %c0_2 = arith.constant 0 : index
    %1 = vector.load %arg3[%c0_1, %c0_2] : memref<1x128xf32, #tpu.memory_space<vmem>>, vector<1x128xf32>
    %2 = vector.broadcast %1 : vector<1x128xf32> to vector<2x128xf32>
    %3 = arith.mulf %0, %2 : vector<2x128xf32>
    %c0_3 = arith.constant 0 : index
    %c0_4 = arith.constant 0 : index
    %4 = vector.load %arg4[%c0_3, %c0_4] : memref<2x128xf32, #tpu.memory_space<vmem>>, vector<2x128xf32>
    tpu.vector_store %arg4[%c0_3, %c0_4], %3 {strides = array<i32>} : memref<2x128xf32, #tpu.memory_space<vmem>>, vector<2x128xf32>,
    return
  }
  func.func @transform_0(%arg0: i32, %arg1: i32) -> (i32, i32) {
    %c0_i32 = arith.constant 0 : i32
    return %arg0, %arg1 : i32, i32
  }
  func.func @transform_1(%arg0: i32, %arg1: i32) -> (i32, i32) {
    %c0_i32 = arith.constant 0 : i32
    %c0_i32_0 = arith.constant 0 : i32
    return %c0_i32, %arg1 : i32, i32
  }
  func.func @transform_2(%arg0: i32, %arg1: i32) -> (i32, i32) {
    %c0_i32 = arith.constant 0 : i32
    return %arg0, %arg1 : i32, i32
  }
}

</mosaic_0001>

<bundles_post_ra>
// kernel: tpu_custom_call.1
= control target key start
LH: loop header
LB: loop body
LE: loop exit
PB: predicated region body
PF: predicated region fallthrough
CT: control target
= control target key end

     0   :  { %7 = vsyncpa [#allocation3], 0  ;;  %s174_s0 = inlined_call_operand.hbm [shape: f32[2,128], index: 0, kind: input, shape index: {}]   ;;  %s175_s1 = inlined_call_operand.hbm [shape: f32[1,128], index: 1, kind: input, shape index: {}]   ;;  %s176_s2 = inlined_call_operand.hbm [shape: f32[2,128], index: 2, kind: output, shape index: {}]  }
   0x1   :  { %8 = vsyncpa [#allocation6], 0 }
   0x2   :  { %9 = vsyncpa [#allocation4], 0  ;;  %s15_s11 = sshll.u32 %s174_s0, 4  ;;  %s147_s12 = smov [#allocation2]   ;;  %s16_s11 = int_to_ptr.hbm [resolvable:$true] %s15_s11 }
   0x3   :  { %s17_s13 = sshll.u32 %s147_s12, 4  ;;  %s26_s16 = sshll.u32 %s175_s1, 4  ;;  %s18_s13 = int_to_ptr.vmem [resolvable:$true] %s17_s13  ;;  %s27_s16 = int_to_ptr.hbm [resolvable:$true] %s26_s16 }
   0x4   :  { %20 = dma.hbm_to_vmem [thread:$0]  %s16_s11, 32, %s18_s13, [#allocation3]  }
   0x5   :  { %s148_s17 = smov [#allocation5]  }
   0x6   :  { %s28_s18 = sshll.u32 %s148_s17, 4  ;;  %s29_s18 = int_to_ptr.vmem [resolvable:$true] %s28_s18 }
   0x7   :  { %31 = dma.hbm_to_vmem [thread:$0]  %s27_s16, 16, %s29_s18, [#allocation6]  }
   0x8   :  { %141 = dma.done.wait [#allocation3], 32  }
   0x9   :  { %142 = vsyncadd [#allocation3], 4294967264 }
   0xa   :  { %143 = dma.done.wait [#allocation6], 16  }
   0xb   :  { %144 = vsyncadd [#allocation6], 4294967280  ;;  %s149_s19 = smov [#allocation7]   ;;  %s54_s22 = sshll.u32 %s176_s2, 4  ;;  %v40_v0 = vld [vmem:[#allocation2] sm:$0x3]  ;;  %s55_s22 = int_to_ptr.hbm [resolvable:$true] %s54_s22 }
   0xc   :  { %s52_s0 = sshll.u32 %s149_s19, 4  ;;  %v68_v1 = vld [vmem:[#allocation5] ss:$0 sm:$0xff]  ;;  %s53_s0 = int_to_ptr.vmem [resolvable:$true] %s52_s0 }
   0xd   :  { %v45_v2 = vmul.f32 %v68_v1, %v40_v0 }
   0xf   :  { %46 = vst [vmem:[#allocation7] sm:$0x3] %v45_v2 }
  0x10   :  { %57 = dma.vmem_to_hbm [thread:$0]  %s53_s0, 32, %s55_s22, [#allocation4]  }
  0x11   :  { %145 = dma.done.wait [#allocation4], 32  }
  0x12   :  { %146 = vsyncadd [#allocation4], 4294967264 }
  0x13   :  { %62 = vsyncpa [#allocation3], 1 }
  0x14   :  { %63 = vsyncpa [#allocation6], 1 }
  0x15   :  { %64 = vsyncpa [#allocation4], 1 }

</bundles_post_ra>
